<compile_context>
chip_gen: v7x
topology: tpu7x:2x2x1
jax: 0.10.0
libtpu: 0.0.40
codegen_flags: <defaults>
</compile_context>

<pallas_src>
import jax
import jax.numpy as jnp
from jax.experimental import pallas as pl
from jax.experimental.pallas import tpu as pltpu

C_IN = 16
C_OUT = 32
KSIZE = 5
STRIDE = 4
BN_EPS = 1e-5
COMPUTE_DTYPE = jnp.bfloat16   # matmul inputs; accumulation stays f32


def conv_bn_relu_kernel(x_ref, w_ref, bias_ref, o_ref):
    # x_ref:    (KSIZE*C_IN, TL) bf16  -- packed taps/channels along sublanes, positions on lanes
    # w_ref:    (C_OUT, KSIZE*C_IN) bf16  -- BN scale already folded in
    # bias_ref: (C_OUT, 1) f32            -- folded BN bias
    # o_ref:    (C_OUT, TL) f32           -- lane-dense NCL output tile
    acc = jnp.dot(w_ref[...], x_ref[...], preferred_element_type=jnp.float32)
    o_ref[...] = jnp.maximum(acc + bias_ref[...], 0.0).astype(o_ref.dtype)


def _round_up(x, m):
    return ((x + m - 1) // m) * m


def signlescale_cnn_module2(x_ncl, weight_oik, gamma, beta, run_mean, run_var, *, max_tile=4096):
    """x_ncl: (N, 16, L) float32, PyTorch NCL layout. Returns (N, 32, L_OUT) float32."""
    n, c_in, length = x_ncl.shape
    assert c_in == C_IN
    l_out = (length - KSIZE) // STRIDE + 1
    assert l_out >= 1

    # ---- fold BatchNorm (running stats) into the conv weights + a per-channel bias ----
    scale = gamma / jnp.sqrt(run_var + BN_EPS)                             # (C_OUT,)
    bias = (beta - run_mean * scale).astype(jnp.float32)                   # (C_OUT,)
    w_scaled = weight_oik.astype(jnp.float32) * scale[:, None, None]       # (C_OUT, C_IN, K)
    # Column index of the packed contraction dim is tap*C_IN + c.
    w_packed = jnp.transpose(w_scaled, (0, 2, 1)).reshape(
        C_OUT, KSIZE * C_IN).astype(COMPUTE_DTYPE)                         # (32, 80)
    bias2d = bias.reshape(C_OUT, 1)

    # ---- pack input (N, 16, L) f32 -> (N, 80, L_out) bf16 in one XLA pass ----
    # Row tap*16 + c of column i equals x[n, c, 4*i + tap]; all source indices are in-bounds
    # (4*(l_out-1) + 4 <= L - 1), so no padding is needed.
    xa = x_ncl[:, :, :STRIDE * l_out].reshape(n, C_IN, l_out, STRIDE)       # [n, c, i, tap0..3]
    xt = x_ncl[:, :, STRIDE:STRIDE * l_out + STRIDE:STRIDE]                 # [n, c, i]   tap 4
    x5 = jnp.concatenate([xa, xt[:, :, :, None]], axis=-1)                  # (N, 16, L_out, 5)
    x_packed = jnp.transpose(x5, (0, 3, 1, 2)).reshape(
        n, KSIZE * C_IN, l_out).astype(COMPUTE_DTYPE)                       # (N, 80, L_out)

    # ---- length tiling: TL multiple of 128, large to amortize per-step overhead ----
    tl = min(max_tile, _round_up(l_out, 128))
    n_tiles = pl.cdiv(l_out, tl)
    # Guarantee >= 2 grid steps along a "parallel" axis when possible (v7x megacore).
    if n * n_tiles < 2 and l_out > 128:
        tl = _round_up(-(-l_out // 2), 128)
        n_tiles = pl.cdiv(l_out, tl)

    flops = 2 * n * n_tiles * tl * (KSIZE * C_IN) * C_OUT
    bytes_accessed = (
        x_packed.size * 2                          # bf16 packed input
        + n * C_OUT * l_out * 4                    # f32 output
        + w_packed.size * 2 + bias2d.size * 4
    )

    out_ncl = pl.pallas_call(
        conv_bn_relu_kernel,
        out_shape=jax.ShapeDtypeStruct((n, C_OUT, l_out), jnp.float32),
        grid=(n, n_tiles),
        in_specs=[
            pl.BlockSpec((pl.Squeezed(), KSIZE * C_IN, tl), lambda b, t: (b, 0, t)),
            pl.BlockSpec((C_OUT, KSIZE * C_IN), lambda b, t: (0, 0)),
            pl.BlockSpec((C_OUT, 1), lambda b, t: (0, 0)),
        ],
        out_specs=pl.BlockSpec((pl.Squeezed(), C_OUT, tl), lambda b, t: (b, 0, t)),
        compiler_params=pltpu.CompilerParams(
            dimension_semantics=("parallel", "parallel"),
        ),
        cost_estimate=pl.CostEstimate(
            flops=flops, transcendentals=0, bytes_accessed=bytes_accessed),
    )(x_packed, w_packed, bias2d)

    # Already exact (N, C_OUT, L_OUT) in PyTorch NCL layout — no trailing slice pass.
    return out_ncl


def _reference(x_ncl, weight_oik, gamma, beta, run_mean, run_var):
    y = jax.lax.conv_general_dilated(
        x_ncl, weight_oik, window_strides=(STRIDE,), padding="VALID",
        dimension_numbers=("NCH", "OIH", "NCH"),
    )
    scale = gamma / jnp.sqrt(run_var + BN_EPS)
    bias = beta - run_mean * scale
    y = y * scale[None, :, None] + bias[None, :, None]
    return jnp.maximum(y, 0.0)


if __name__ == "__main__":
    key = jax.random.PRNGKey(0)
    k_x, k_w, k_g, k_b, k_m, k_v, k_x2 = jax.random.split(key, 7)

    # Deterministic synthetic parameters (shapes per nn.Conv1d / nn.BatchNorm1d).
    weight = 0.1 * jax.random.normal(k_w, (C_OUT, C_IN, KSIZE), dtype=jnp.float32)
    gamma = 1.0 + 0.1 * jax.random.normal(k_g, (C_OUT,), dtype=jnp.float32)
    beta = 0.1 * jax.random.normal(k_b, (C_OUT,), dtype=jnp.float32)
    run_mean = 0.05 * jax.random.normal(k_m, (C_OUT,), dtype=jnp.float32)
    run_var = 1.0 + 0.1 * jax.random.uniform(k_v, (C_OUT,), dtype=jnp.float32)

    # Case 1: small length -> single partial tile, exercises masked output stores.
    N1, L1 = 2, 61                    # l_out = (61 - 5)//4 + 1 = 15
    x1 = jax.random.normal(k_x, (N1, C_IN, L1), dtype=jnp.float32)
    out1 = jax.block_until_ready(
        signlescale_cnn_module2(x1, weight, gamma, beta, run_mean, run_var))
    ref1 = _reference(x1, weight, gamma, beta, run_mean, run_var)
    assert out1.shape == (N1, C_OUT, 15), out1.shape
    err1 = float(jnp.max(jnp.abs(out1 - ref1)))
    assert jnp.allclose(out1, ref1, atol=3e-2, rtol=3e-2), err1

    # Case 2: N=1, longer length -> L axis split into 2 tiles (megacore path) + partial tail.
    N2, L2 = 1, 1157                  # l_out = (1157 - 5)//4 + 1 = 289
    x2 = jax.random.normal(k_x2, (N2, C_IN, L2), dtype=jnp.float32)
    out2 = jax.block_until_ready(
        signlescale_cnn_module2(x2, weight, gamma, beta, run_mean, run_var))
    ref2 = _reference(x2, weight, gamma, beta, run_mean, run_var)
    assert out2.shape == (N2, C_OUT, 289), out2.shape
    err2 = float(jnp.max(jnp.abs(out2 - ref2)))
    assert jnp.allclose(out2, ref2, atol=3e-2, rtol=3e-2), err2

    print("KERNEL_OK")
</pallas_src>

<mosaic_0001>
module attributes {stable_mosaic.version = 11 : i64} {
  func.func @conv_bn_relu_kernel(%arg0: i32, %arg1: i32, %arg2: memref<1x80x128xbf16, #tpu.memory_space<vmem>>, %arg3: memref<32x80xbf16, #tpu.memory_space<vmem>>, %arg4: memref<32x1xf32, #tpu.memory_space<vmem>>, %arg5: memref<1x32x128xf32, #tpu.memory_space<vmem>>) attributes {dimension_semantics = [#tpu.dimension_semantics<parallel>, #tpu.dimension_semantics<parallel>], iteration_bounds = array<i64: 2, 1>, scalar_prefetch = 0 : i64, scratch_operands = 0 : i64, tpu.core_type = #tpu.core_type<tc>, window_params = [{transform_indices = @transform_0, window_bounds = array<i64: 1, 80, 128>}, {pipeline_mode = #tpu.pipeline_mode<synchronous>, transform_indices = @transform_1, window_bounds = array<i64: 32, 80>}, {pipeline_mode = #tpu.pipeline_mode<synchronous>, transform_indices = @transform_2, window_bounds = array<i64: 32, 1>}, {transform_indices = @transform_3, window_bounds = array<i64: 1, 32, 128>}]} {
    %c0 = arith.constant 0 : index
    %c0_0 = arith.constant 0 : index
    %0 = vector.load %arg3[%c0, %c0_0] : memref<32x80xbf16, #tpu.memory_space<vmem>>, vector<32x80xbf16>
    %c0_1 = arith.constant 0 : index
    %c0_2 = arith.constant 0 : index
    %c0_3 = arith.constant 0 : index
    %1 = vector.load %arg2[%c0_1, %c0_2, %c0_3] : memref<1x80x128xbf16, #tpu.memory_space<vmem>>, vector<1x80x128xbf16>
    %2 = vector.shape_cast %1 : vector<1x80x128xbf16> to vector<80x128xbf16>
    %cst = arith.constant dense<0.000000e+00> : vector<32x128xf32>
    %3 = tpu.matmul %0, %2, %cst {dimension_numbers = #tpu.dot_dimension_numbers<[1], [0], [0], [1], [0, 0, 1, 1], [], []>} : vector<32x80xbf16>, vector<80x128xbf16>, vector<32x128xf32> -> vector<32x128xf32>
    %c0_4 = arith.constant 0 : index
    %c0_5 = arith.constant 0 : index
    %4 = vector.load %arg4[%c0_4, %c0_5] : memref<32x1xf32, #tpu.memory_space<vmem>>, vector<32x1xf32>
    %5 = vector.broadcast %4 : vector<32x1xf32> to vector<32x128xf32>
    %6 = arith.addf %3, %5 : vector<32x128xf32>
    %cst_6 = arith.constant 0.000000e+00 : f32
    %7 = vector.broadcast %cst_6 : f32 to vector<32x128xf32>
    %8 = arith.maximumf %6, %7 : vector<32x128xf32>
    %c0_7 = arith.constant 0 : index
    %c0_8 = arith.constant 0 : index
    %c0_9 = arith.constant 0 : index
    %9 = vector.load %arg5[%c0_7, %c0_8, %c0_9] : memref<1x32x128xf32, #tpu.memory_space<vmem>>, vector<1x32x128xf32>
    %10 = vector.shape_cast %9 : vector<1x32x128xf32> to vector<32x128xf32>
    %11 = vector.shape_cast %8 : vector<32x128xf32> to vector<1x32x128xf32>
    tpu.vector_store %arg5[%c0_7, %c0_8, %c0_9], %11 {strides = array<i32>} : memref<1x32x128xf32, #tpu.memory_space<vmem>>, vector<1x32x128xf32>,
    return
  }
  func.func @transform_0(%arg0: i32, %arg1: i32) -> (i32, i32, i32) {
    %c0_i32 = arith.constant 0 : i32
    %c0_i32_0 = arith.constant 0 : i32
    return %arg0, %c0_i32, %arg1 : i32, i32, i32
  }
  func.func @transform_1(%arg0: i32, %arg1: i32) -> (i32, i32) {
    %c0_i32 = arith.constant 0 : i32
    %c0_i32_0 = arith.constant 0 : i32
    %c0_i32_1 = arith.constant 0 : i32
    return %c0_i32, %c0_i32_0 : i32, i32
  }
  func.func @transform_2(%arg0: i32, %arg1: i32) -> (i32, i32) {
    %c0_i32 = arith.constant 0 : i32
    %c0_i32_0 = arith.constant 0 : i32
    %c0_i32_1 = arith.constant 0 : i32
    return %c0_i32, %c0_i32_0 : i32, i32
  }
  func.func @transform_3(%arg0: i32, %arg1: i32) -> (i32, i32, i32) {
    %c0_i32 = arith.constant 0 : i32
    %c0_i32_0 = arith.constant 0 : i32
    return %arg0, %c0_i32, %arg1 : i32, i32, i32
  }
}

</mosaic_0001>

<bundles_post_ra>
// kernel: tpu_custom_call.1
= control target key start
LH: loop header
LB: loop body
LE: loop exit
PB: predicated region body
PF: predicated region fallthrough
CT: control target
= control target key end

     0   :  { %s549_s12 = smov 0   ;;  %s551_s13 = smov 0   ;;  %s606_s0 = inlined_call_operand.vmem [shape: bf16[2,80,15], index: 0, kind: input, shape index: {}]   ;;  %s607_s1 = inlined_call_operand.vmem [shape: bf16[32,80], index: 1, kind: input, shape index: {}]   ;;  %s608_s2 = inlined_call_operand.vmem [shape: f32[32,1], index: 2, kind: input, shape index: {}]   ;;  %s609_s3 = inlined_call_operand.vmem [shape: f32[2,32,15], index: 3, kind: output, shape index: {}]  }
   0x1   :  { %s553_s14 = smov 0  }
   0x2 LB: > { %s25_s15 = sadd.s32 1, %s522_s13  ;;  %p432_p0 = scmp.ge.s32.totalorder %s526_s14, 1  ;;  %s526_s14 = sphi %s553_s14, %s13_s14   ;;  %s522_s13 = sphi %s551_s13, %s611_s13   ;;  %s518_s12 = sphi %s549_s12, %s610_s12  }
   0x3   : > { %p27_p1 = scmp.ge.s32.totalorder %s25_s15, 2  ;;  %p156_p2 = scmp.lt.s32.totalorder %s526_s14, 3 }
   0x5   : > { %s613_s15 = smov (%p27_p1, %s25_s15), 0  ;;  %p157_p3 = pnand %p432_p0, %p156_p2 }
   0x6   : > { %p186_p4 = scmp.lt.s32.totalorder (!%p157_p3), %s518_s12, 1  ;;  %v502_v0 = vld [vmem:[%s607_s1] sm:$0xff] (!%p157_p3)   ;;  %vm281_vm0 = vcmask (!%p157_p3), 654336   ;;  %v219_v1 = vld [vmem:[%s608_s2 + $0x10] sm:$0xff] (!%p157_p3)  ;;  %v528_v3 = vmov (!%p157_p3), 0   ;;  %v220_v4 = vld [vmem:[%s608_s2 + $0x18] sm:$0xff] (!%p157_p3) }
   0x7   : > { %160 = sbr.rel (%p157_p3) target bundleno = 259 (0x103), region = 32  ;;  %465 = vmatprep.mubr.msk.bf16.mxu0 (!%p157_p3), %vm281_vm0, %v502_v0  ;;  %v217_v2 = vld [vmem:[%s608_s2] sm:$0xff] (!%p157_p3)  ;;  %496 = vset.pattern.permute.xlu1 (!%p157_p3), %v528_v3  ;;  %v218_v5 = vld [vmem:[%s608_s2 + $0x8] sm:$0xff] (!%p157_p3) }
   0x8   : > { %495 = vset.pattern.permute.xlu0 (!%p157_p3), %v528_v3  ;;  %233 = vperm.xlu1 (!%p157_p3), %496, %v219_v1   ;;  %v503_v11 = vld [vmem:[%s607_s1 + $0x8] sm:$0xff] (!%p157_p3)  }
   0x9   : > { %223 = vperm.xlu0 (!%p157_p3), %495, %v217_v2  }
   0xc   : > { %238 = vperm.xlu1 (!%p157_p3), %496, %v220_v4  }
   0xd   : > { %228 = vperm.xlu0 (!%p157_p3), %495, %v218_v5  }
   0xe   : > { %s615_s12 = smov (!%p186_p4, %s518_s12), 1 }
   0xf   : > { %s469_s22 = smul.u32 40, %s615_s12  ;;  %s447_s5 = sshll.u32 %s615_s12, 5 }
  0x10   : > { %s201_s8 = scalar_lea.vmem %s609_s3, %s447_s5 }
  0x11   : > { %s193_s29 = scalar_lea.vmem %s606_s0, %s469_s22 }
  0x12   : > { %v497_v6 = vld [vmem:[%s193_s29] sm:$0xff]   ;;  %v498_v7 = vld [vmem:[%s193_s29 + $0x8] sm:$0xff]   ;;  %v499_v8 = vld [vmem:[%s193_s29 + $0x10] sm:$0xff]  }
  0x13   : > { %455 = vmatprep.subr.bf16.mxu0 %v497_v6  ;;  %v500_v9 = vld [vmem:[%s193_s29 + $0x18] sm:$0xff]   ;;  %v501_v10 = vld [vmem:[%s193_s29 + $0x20] sm:$0xff]  }
  0x14   : > { %456 = vmatpush3.bf16.msra.mxu0 %v497_v6 }
  0x15   : > { %457 = vmatprep.subr.bf16.mxu0 %v498_v7 }
  0x18   : > { %458 = vmatpush3.bf16.msra.mxu0 %v498_v7 }
  0x19   : > { %459 = vmatprep.subr.bf16.mxu0 %v499_v8 }
  0x1c   : > { %460 = vmatpush3.bf16.msra.mxu0 %v499_v8 }
  0x1d   : > { %461 = vmatprep.subr.bf16.mxu0 %v500_v9 }
  0x20   : > { %462 = vmatpush3.bf16.msra.mxu0 %v500_v9 }
  0x21   : > { %463 = vmatprep.subr.bf16.mxu0 %v501_v10 }
  0x24   : > { %464 = vmatpush3.bf16.msra.mxu0 %v501_v10 }
  0x27   : > { %466 = vmatmul.mubr.msk.bf16.vlgmr.msra.gmra.mrb[0].mxu0 %vm281_vm0, %v503_v11 }
  0x87   : > { %v234_v12 = vpop.permute.xlu1 %233 }
  0x88   : > { %v224_v13 = vpop.permute.xlu0 %223 }
  0x8b   : > { %v239_v17 = vpop.permute.xlu1 %238 }
  0x8c   : > { %v229_v20 = vpop.permute.xlu0 %228 }
  0xfa   : > { %v467_v14 = vpop.f32.mrb[0].mxu0 }
  0xfb   : > { %v331_v15 = vadd.f32 %v467_v14, %v234_v12  ;;  %v322_v16 = vpop.f32.mrb[1].mxu0 }
  0xfc   : > { %v323_v18 = vadd.f32 %v322_v16, %v224_v13  ;;  %v468_v19 = vpop.f32.mrb[2].mxu0 }
  0xfd   : > { %v339_v21 = vmax.f32 %v331_v15, 0.0  ;;  %v334_v22 = vadd.f32 %v468_v19, %v239_v17  ;;  %v325_v23 = vpop.f32.mrb[3].mxu0 }
  0xfe   : > { %v337_v24 = vmax.f32 %v323_v18, 0.0  ;;  %v326_v25 = vadd.f32 %v325_v23, %v229_v20 }
  0xff   : > { %343 = vst [vmem:[%s201_s8 + $0x10] sm:$0xff] %v339_v21  ;;  %v340_v26 = vmax.f32 %v334_v22, 0.0 }
 0x100   : > { %341 = vst [vmem:[%s201_s8] sm:$0xff] %v337_v24  ;;  %v338_v27 = vmax.f32 %v326_v25, 0.0 }
 0x101   : > { %344 = vst [vmem:[%s201_s8 + $0x18] sm:$0xff] %v340_v26 }
 0x102   : > { %342 = vst [vmem:[%s201_s8 + $0x8] sm:$0xff] %v338_v27 }
 0x103 PF: > { %s13_s14 = sadd.s32 1, %s526_s14   ;;  %s610_s12 = smov %s522_s13 }
 0x104   : > { %p10_p5 = scmp.ge.s32.totalorder %s13_s14, 4   ;;  %s611_s13 = smov %s613_s15 }
 0x106   :  { %12 = sbr.rel (!%p10_p5) target bundleno = 2 (0x2), region = 62 }

</bundles_post_ra>
